<compile_context>
chip_gen: v6e
topology: v6e:2x2x1
jax: 0.10.0
libtpu: 0.0.40
codegen_flags: <defaults>
</compile_context>

<pallas_src>
import math

import jax
import jax.numpy as jnp
import numpy as np
from jax.experimental import pallas as pl
from jax.experimental.pallas import tpu as pltpu

_INV_SQRT2 = float(1.0 / np.sqrt(2.0))
_MAX_TILE_ROWS = 1024            # cap on rows/tile for the resident-bias path


def _round_up(v, m):
    return (v + m - 1) // m * m


def _cdiv(a, b):
    return -(-a // b)


def _vmem_capacity_bytes():
    try:
        return int(pltpu.get_tpu_info().vmem_capacity_bytes)
    except Exception:
        return None


_BUFFERED1_OK = None


def _buffered_one_supported():
    """Probe once whether pipeline_mode=pl.Buffered(1) compiles on this build."""
    global _BUFFERED1_OK
    if _BUFFERED1_OK is None:
        try:
            def _probe_kernel(a_ref, o_ref):
                o_ref[...] = a_ref[...] + 1.0

            fn = pl.pallas_call(
                _probe_kernel,
                out_shape=jax.ShapeDtypeStruct((8, 128), jnp.float32),
                grid_spec=pltpu.PrefetchScalarGridSpec(
                    num_scalar_prefetch=0,
                    grid=(2,),
                    in_specs=[pl.BlockSpec((8, 128), lambda i: (0, 0),
                                           pipeline_mode=pl.Buffered(1))],
                    out_specs=pl.BlockSpec((8, 128), lambda i: (0, 0)),
                ),
            )
            jax.block_until_ready(fn(jnp.zeros((8, 128), jnp.float32)))
            _BUFFERED1_OK = True
        except Exception:
            _BUFFERED1_OK = False
    return _BUFFERED1_OK


def _adapter_kernel(x_ref, w1_ref, b1_ref, w2_ref, b2_ref, o_ref):
    # x_ref: (tile_m, D_in) rows of the flattened (B*T, D_in) input, native dtype.
    x = x_ref[...].astype(jnp.float32)

    # --- LayerNorm statistics (nn.LayerNorm default eps=1e-5), f32.
    #     gamma/beta are folded into W1 / the per-row bias, so only normalize here.
    mean = jnp.mean(x, axis=-1, keepdims=True)
    var = jnp.mean(jnp.square(x - mean), axis=-1, keepdims=True)
    xn = (x - mean) * jax.lax.rsqrt(var + 1e-5)

    # --- Linear1 on the MXU (bf16 operands, f32 accumulation).
    #     W1 already contains gamma; b1_ref = (beta + pos_emb) @ W1 + b1 per row.
    h = jnp.dot(xn.astype(jnp.bfloat16), w1_ref[...],
                preferred_element_type=jnp.float32) + b1_ref[...]

    # --- exact erf-based GELU (PyTorch nn.GELU() default), f32 on VPU/EUP.
    h = 0.5 * h * (1.0 + jax.lax.erf(h * jnp.float32(_INV_SQRT2)))

    # --- Linear2 on the MXU (bf16 operands, f32 accumulation) + bias.
    y = jnp.dot(h.astype(jnp.bfloat16), w2_ref[...],
                preferred_element_type=jnp.float32) + b2_ref[...]

    o_ref[...] = y.astype(o_ref.dtype)


def prepare_adapter_params(params):
    """One-time parameter preprocessing (pad, fold, bf16 cast). Call once, reuse."""
    ln_w = params["ln_w"].astype(jnp.float32)
    ln_b = params["ln_b"].astype(jnp.float32)
    pos = params["pos_emb"].astype(jnp.float32)          # (T, D_in)
    w1 = params["w1"].astype(jnp.float32)                # (D_in, D_out)
    b1 = params["b1"].astype(jnp.float32)
    w2 = params["w2"].astype(jnp.float32)                # (D_out, D_out)
    b2 = params["b2"].astype(jnp.float32)

    T, D_in = pos.shape
    D_out = w1.shape[1]
    D_out_pad = _round_up(D_out, 128)                    # lane-dense output columns
    pad_n = D_out_pad - D_out

    # Fold LN gamma into W1 (in f32, before the bf16 cast) and fold
    # (LN beta + pos_emb) @ W1 + b1 into a per-position bias.
    w1g = ln_w[:, None] * w1
    b1_eff = (jnp.dot(ln_b[None, :] + pos, w1,
                      precision=jax.lax.Precision.HIGHEST) + b1[None, :])   # (T, D_out)

    if pad_n:
        w1g = jnp.pad(w1g, ((0, 0), (0, pad_n)))
        b1_eff = jnp.pad(b1_eff, ((0, 0), (0, pad_n)))
        w2 = jnp.pad(w2, ((0, pad_n), (0, pad_n)))
        b2 = jnp.pad(b2, (0, pad_n))

    return {
        "T": T, "D_in": D_in, "D_out": D_out, "D_out_pad": D_out_pad,
        "w1": w1g.astype(jnp.bfloat16),                  # (D_in, D_out_pad) bf16
        "w2": w2.astype(jnp.bfloat16),                   # (D_out_pad, D_out_pad) bf16
        "b1_eff": b1_eff.astype(jnp.float32),            # (T, D_out_pad) f32
        "b2": b2.reshape(1, D_out_pad).astype(jnp.float32),
        "other_tokens": params["other_tokens"],
    }


def _choose_tile_m(M, unit, target_rows):
    """Largest multiple of `unit` <= target_rows, reduced so there are >= 2 M-tiles
    when M allows (keeps both v7x TensorCores busy via the 'parallel' axis)."""
    k = max(1, target_rows // unit)
    n_units = _cdiv(M, unit)
    if n_units >= 2 and _cdiv(n_units, k) < 2:
        k = n_units // 2
    k = max(1, min(k, n_units))
    return k * unit


def _vmem_limit_bytes(*, tile_m, D_in, D_out_pad, x_itemsize, out_itemsize,
                      resident_bias, weight_bufs, cap):
    """Budget from actual block footprints, clamped to ~90% of physical VMEM."""
    weights = ((D_in + D_out_pad) * D_out_pad * 2 + D_out_pad * 4) * weight_bufs
    bias = tile_m * D_out_pad * 4
    if resident_bias:
        weights += bias * weight_bufs
        bias_stream = 0
    else:
        bias_stream = 2 * bias
    streams = (2 * tile_m * D_in * x_itemsize
               + 2 * tile_m * D_out_pad * out_itemsize + bias_stream)
    live = tile_m * (D_in + 2 * D_out_pad) * 4           # xn, h, y f32 working values
    est = int((weights + streams + live) * 1.25) + (8 << 20)
    hard_cap = int(cap * 0.9) if cap else (56 << 20)
    return min(hard_cap, max(est, 32 << 20))


def image_adapter_core(x, prep, *, out_dtype=None):
    """LayerNorm + pos_emb + Linear1 + GELU + Linear2 for x of shape (B, T, D_in)."""
    B, T, D_in = x.shape
    assert T == prep["T"] and D_in == prep["D_in"], (x.shape, prep["T"], prep["D_in"])
    D_out, D_out_pad = prep["D_out"], prep["D_out_pad"]
    out_dtype = x.dtype if out_dtype is None else out_dtype
    M = B * T

    cap = _vmem_capacity_bytes()
    target_rows = 512 if (cap is not None and cap >= 96 * (1 << 20)) else 256

    period = (T * 8) // math.gcd(T, 8)                   # lcm(T, 8)
    resident_bias = period <= _MAX_TILE_ROWS
    unit = period if resident_bias else 8
    tile_m = _choose_tile_m(M, unit, max(target_rows, unit))
    M_pad = _round_up(M, tile_m)

    x2 = x.reshape(M, D_in)                              # native dtype, no extra copy
    if M_pad != M:
        x2 = jnp.pad(x2, ((0, M_pad - M), (0, 0)))

    single_buf = _buffered_one_supported()
    const_kw = {"pipeline_mode": pl.Buffered(1)} if single_buf else {}

    if resident_bias:
        # Per-position bias replicated once to a resident (tile_m, D_out_pad) block.
        b1_rows = jnp.tile(prep["b1_eff"], (tile_m // T, 1))
        b1_spec = pl.BlockSpec((tile_m, D_out_pad), lambda i: (0, 0), **const_kw)
    else:
        # TODO(synk): streamed fallback (lcm(T, 8) > _MAX_TILE_ROWS) materializes an
        # (M_pad, D_out_pad) f32 bias; not bandwidth-optimal.
        b1_rows = jnp.tile(prep["b1_eff"], (_cdiv(M_pad, T), 1))[:M_pad]
        b1_spec = pl.BlockSpec((tile_m, D_out_pad), lambda i: (i, 0))

    vmem_limit = _vmem_limit_bytes(
        tile_m=tile_m, D_in=D_in, D_out_pad=D_out_pad,
        x_itemsize=x2.dtype.itemsize, out_itemsize=jnp.dtype(out_dtype).itemsize,
        resident_bias=resident_bias, weight_bufs=1 if single_buf else 2, cap=cap)

    grid_spec = pltpu.PrefetchScalarGridSpec(
        num_scalar_prefetch=0,
        grid=(M_pad // tile_m,),
        in_specs=[
            pl.BlockSpec((tile_m, D_in), lambda i: (i, 0)),                      # x rows
            pl.BlockSpec((D_in, D_out_pad), lambda i: (0, 0), **const_kw),       # W1 (gamma folded, bf16)
            b1_spec,                                                             # per-row bias
            pl.BlockSpec((D_out_pad, D_out_pad), lambda i: (0, 0), **const_kw),  # W2 (bf16)
            pl.BlockSpec((1, D_out_pad), lambda i: (0, 0), **const_kw),          # b2
        ],
        out_specs=pl.BlockSpec((tile_m, D_out_pad), lambda i: (i, 0)),
    )

    y = pl.pallas_call(
        _adapter_kernel,
        out_shape=jax.ShapeDtypeStruct((M_pad, D_out_pad), out_dtype),
        grid_spec=grid_spec,
        compiler_params=pltpu.CompilerParams(
            dimension_semantics=("parallel",),
            vmem_limit_bytes=vmem_limit,
        ),
    )(x2, prep["w1"], b1_rows, prep["w2"], prep["b2"])

    return y[:M, :D_out].reshape(B, T, D_out)


def image_adapter_forward(vision_outputs, prep, *, out_dtype=None):
    """vision_outputs: (L, B, T, D_in) stack of hidden states (deep_extract=False)."""
    x = vision_outputs[-2]                                # (B, T, D_in)
    y = image_adapter_core(x, prep, out_dtype=out_dtype)
    B, _, D_out = y.shape
    # other_tokens(torch.tensor([0, 1])).expand(B, -1): rows 0 and 1 of the embedding.
    other = prep["other_tokens"][jnp.array([0, 1])].astype(y.dtype)   # (2, D_out)
    other = jnp.broadcast_to(other[None, :, :], (B, 2, D_out))
    return jnp.concatenate([other[:, 0:1], y, other[:, 1:2]], axis=1)


def _reference_forward(vision_outputs, params):
    """Plain-JAX f32 reference for correctness checking."""
    x = vision_outputs[-2].astype(jnp.float32)
    mean = jnp.mean(x, axis=-1, keepdims=True)
    var = jnp.mean((x - mean) ** 2, axis=-1, keepdims=True)
    x = (x - mean) / jnp.sqrt(var + 1e-5)
    x = x * params["ln_w"] + params["ln_b"]
    x = x + params["pos_emb"][None]
    h = x @ params["w1"] + params["b1"]
    h = 0.5 * h * (1.0 + jax.lax.erf(h / jnp.sqrt(2.0)))
    y = h @ params["w2"] + params["b2"]
    B = y.shape[0]
    other = params["other_tokens"][jnp.array([0, 1])]
    other = jnp.broadcast_to(other[None, :, :], (B, 2, other.shape[-1]))
    return jnp.concatenate([other[:, 0:1], y, other[:, 1:2]], axis=1)


if __name__ == "__main__":
    # Small shapes consistent with the module.
    L, B, T = 4, 2, 8            # num hidden-state layers, batch, num_image_tokens
    D_in, D_out = 32, 32         # input_features, output_features

    key = jax.random.PRNGKey(0)
    keys = jax.random.split(key, 8)

    # Deterministic "synthetic checkpoint" parameter init.
    lim1 = 1.0 / np.sqrt(D_in)
    lim2 = 1.0 / np.sqrt(D_out)
    params = {
        "ln_w": jnp.ones((D_in,), jnp.float32),                # LayerNorm gamma init = 1
        "ln_b": jnp.zeros((D_in,), jnp.float32),               # LayerNorm beta init = 0
        # pos_emb is zero-initialized in the module; small random here so the
        # add is actually exercised.
        "pos_emb": 0.01 * jax.random.normal(keys[0], (T, D_in), jnp.float32),
        "w1": jax.random.uniform(keys[1], (D_in, D_out), jnp.float32, -lim1, lim1),
        "b1": jax.random.uniform(keys[2], (D_out,), jnp.float32, -lim1, lim1),
        "w2": jax.random.uniform(keys[3], (D_out, D_out), jnp.float32, -lim2, lim2),
        "b2": jax.random.uniform(keys[4], (D_out,), jnp.float32, -lim2, lim2),
        "other_tokens": 0.02 * jax.random.normal(keys[5], (3, D_out), jnp.float32),
    }

    vision_outputs = jax.random.normal(keys[6], (L, B, T, D_in), jnp.float32)

    # One-time parameter preparation (pad, fold gamma/beta/pos, bf16 cast).
    prep = jax.tree_util.tree_map(
        lambda a: jax.block_until_ready(a) if isinstance(a, jax.Array) else a,
        prepare_adapter_params(params))

    out = jax.block_until_ready(image_adapter_forward(vision_outputs, prep))
    assert out.shape == (B, T + 2, D_out), out.shape

    ref = _reference_forward(vision_outputs, params)
    # bf16 MXU operands (f32 accumulation) -> ~1e-2-level agreement with the
    # all-f32 reference; LN / GELU / bias folds are exact f32.
    np.testing.assert_allclose(np.asarray(out), np.asarray(ref), rtol=2e-2, atol=2e-2)

    print("KERNEL_OK")
</pallas_src>

<mosaic_0001>
module attributes {stable_mosaic.version = 11 : i64} {
  func.func @_probe_kernel(%arg0: i32, %arg1: memref<8x128xf32, #tpu.memory_space<vmem>>, %arg2: memref<8x128xf32, #tpu.memory_space<vmem>>) attributes {dimension_semantics = [#tpu.dimension_semantics<arbitrary>], iteration_bounds = array<i64: 2>, scalar_prefetch = 0 : i64, scratch_operands = 0 : i64, tpu.core_type = #tpu.core_type<tc>, window_params = [{pipeline_mode = #tpu.pipeline_mode<synchronous>, transform_indices = @transform_0, window_bounds = array<i64: 8, 128>}, {pipeline_mode = #tpu.pipeline_mode<synchronous>, transform_indices = @transform_1, window_bounds = array<i64: 8, 128>}]} {
    %c0 = arith.constant 0 : index
    %c0_0 = arith.constant 0 : index
    %0 = vector.load %arg1[%c0, %c0_0] : memref<8x128xf32, #tpu.memory_space<vmem>>, vector<8x128xf32>
    %cst = arith.constant 1.000000e+00 : f32
    %1 = vector.broadcast %cst : f32 to vector<8x128xf32>
    %2 = arith.addf %0, %1 : vector<8x128xf32>
    %c0_1 = arith.constant 0 : index
    %c0_2 = arith.constant 0 : index
    %3 = vector.load %arg2[%c0_1, %c0_2] : memref<8x128xf32, #tpu.memory_space<vmem>>, vector<8x128xf32>
    tpu.vector_store %arg2[%c0_1, %c0_2], %2 {strides = array<i32>} : memref<8x128xf32, #tpu.memory_space<vmem>>, vector<8x128xf32>,
    return
  }
  func.func @transform_0(%arg0: i32) -> (i32, i32) {
    %c0_i32 = arith.constant 0 : i32
    %c0_i32_0 = arith.constant 0 : i32
    %c0_i32_1 = arith.constant 0 : i32
    return %c0_i32, %c0_i32_0 : i32, i32
  }
  func.func @transform_1(%arg0: i32) -> (i32, i32) {
    %c0_i32 = arith.constant 0 : i32
    %c0_i32_0 = arith.constant 0 : i32
    %c0_i32_1 = arith.constant 0 : i32
    return %c0_i32, %c0_i32_0 : i32, i32
  }
}

module attributes {stable_mosaic.version = 11 : i64} {
  func.func @_adapter_kernel(%arg0: i32, %arg1: memref<8x32xf32, #tpu.memory_space<vmem>>, %arg2: memref<32x128xbf16, #tpu.memory_space<vmem>>, %arg3: memref<8x128xf32, #tpu.memory_space<vmem>>, %arg4: memref<128x128xbf16, #tpu.memory_space<vmem>>, %arg5: memref<1x128xf32, #tpu.memory_space<vmem>>, %arg6: memref<8x128xf32, #tpu.memory_space<vmem>>) attributes {dimension_semantics = [#tpu.dimension_semantics<parallel>], iteration_bounds = array<i64: 2>, scalar_prefetch = 0 : i64, scratch_operands = 0 : i64, tpu.core_type = #tpu.core_type<tc>, window_params = [{transform_indices = @transform_0, window_bounds = array<i64: 8, 32>}, {pipeline_mode = #tpu.pipeline_mode<synchronous>, transform_indices = @transform_1, window_bounds = array<i64: 32, 128>}, {pipeline_mode = #tpu.pipeline_mode<synchronous>, transform_indices = @transform_2, window_bounds = array<i64: 8, 128>}, {pipeline_mode = #tpu.pipeline_mode<synchronous>, transform_indices = @transform_3, window_bounds = array<i64: 128, 128>}, {pipeline_mode = #tpu.pipeline_mode<synchronous>, transform_indices = @transform_4, window_bounds = array<i64: 1, 128>}, {transform_indices = @transform_5, window_bounds = array<i64: 8, 128>}]} {
    %c0 = arith.constant 0 : index
    %c0_0 = arith.constant 0 : index
    %0 = vector.load %arg1[%c0, %c0_0] : memref<8x32xf32, #tpu.memory_space<vmem>>, vector<8x32xf32>
    %cst = arith.constant dense<0.000000e+00> : vector<8xf32>
    %1 = vector.multi_reduction <add>, %0, %cst [1] : vector<8x32xf32> to vector<8xf32>
    %2 = vector.shape_cast %1 : vector<8xf32> to vector<8x1xf32>
    %cst_1 = arith.constant 3.200000e+01 : f32
    %3 = vector.broadcast %cst_1 : f32 to vector<8x1xf32>
    %4 = arith.divf %2, %3 : vector<8x1xf32>
    %5 = vector.broadcast %4 : vector<8x1xf32> to vector<8x32xf32>
    %6 = arith.subf %0, %5 : vector<8x32xf32>
    %7 = arith.mulf %6, %6 : vector<8x32xf32>
    %cst_2 = arith.constant dense<0.000000e+00> : vector<8xf32>
    %8 = vector.multi_reduction <add>, %7, %cst_2 [1] : vector<8x32xf32> to vector<8xf32>
    %9 = vector.shape_cast %8 : vector<8xf32> to vector<8x1xf32>
    %cst_3 = arith.constant 3.200000e+01 : f32
    %10 = vector.broadcast %cst_3 : f32 to vector<8x1xf32>
    %11 = arith.divf %9, %10 : vector<8x1xf32>
    %12 = vector.broadcast %4 : vector<8x1xf32> to vector<8x32xf32>
    %13 = arith.subf %0, %12 : vector<8x32xf32>
    %cst_4 = arith.constant 9.99999974E-6 : f32
    %14 = vector.broadcast %cst_4 : f32 to vector<8x1xf32>
    %15 = arith.addf %11, %14 : vector<8x1xf32>
    %16 = math.rsqrt %15 : vector<8x1xf32>
    %17 = vector.broadcast %16 : vector<8x1xf32> to vector<8x32xf32>
    %18 = arith.mulf %13, %17 : vector<8x32xf32>
    %19 = arith.truncf %18 : vector<8x32xf32> to vector<8x32xbf16>
    %c0_5 = arith.constant 0 : index
    %c0_6 = arith.constant 0 : index
    %20 = vector.load %arg2[%c0_5, %c0_6] : memref<32x128xbf16, #tpu.memory_space<vmem>>, vector<32x128xbf16>
    %cst_7 = arith.constant dense<0.000000e+00> : vector<8x128xf32>
    %21 = tpu.matmul %19, %20, %cst_7 {dimension_numbers = #tpu.dot_dimension_numbers<[1], [0], [0], [1], [0, 0, 1, 1], [], []>} : vector<8x32xbf16>, vector<32x128xbf16>, vector<8x128xf32> -> vector<8x128xf32>
    %c0_8 = arith.constant 0 : index
    %c0_9 = arith.constant 0 : index
    %22 = vector.load %arg3[%c0_8, %c0_9] : memref<8x128xf32, #tpu.memory_space<vmem>>, vector<8x128xf32>
    %23 = arith.addf %21, %22 : vector<8x128xf32>
    %cst_10 = arith.constant 5.000000e-01 : f32
    %24 = vector.broadcast %cst_10 : f32 to vector<8x128xf32>
    %25 = arith.mulf %24, %23 : vector<8x128xf32>
    %cst_11 = arith.constant 0.707106769 : f32
    %26 = vector.broadcast %cst_11 : f32 to vector<8x128xf32>
    %27 = arith.mulf %23, %26 : vector<8x128xf32>
    %28 = math.erf %27 : vector<8x128xf32>
    %cst_12 = arith.constant 1.000000e+00 : f32
    %29 = vector.broadcast %cst_12 : f32 to vector<8x128xf32>
    %30 = arith.addf %29, %28 : vector<8x128xf32>
    %31 = arith.mulf %25, %30 : vector<8x128xf32>
    %32 = arith.truncf %31 : vector<8x128xf32> to vector<8x128xbf16>
    %c0_13 = arith.constant 0 : index
    %c0_14 = arith.constant 0 : index
    %33 = vector.load %arg4[%c0_13, %c0_14] : memref<128x128xbf16, #tpu.memory_space<vmem>>, vector<128x128xbf16>
    %cst_15 = arith.constant dense<0.000000e+00> : vector<8x128xf32>
    %34 = tpu.matmul %32, %33, %cst_15 {dimension_numbers = #tpu.dot_dimension_numbers<[1], [0], [0], [1], [0, 0, 1, 1], [], []>} : vector<8x128xbf16>, vector<128x128xbf16>, vector<8x128xf32> -> vector<8x128xf32>
    %c0_16 = arith.constant 0 : index
    %c0_17 = arith.constant 0 : index
    %35 = vector.load %arg5[%c0_16, %c0_17] : memref<1x128xf32, #tpu.memory_space<vmem>>, vector<1x128xf32>
    %36 = vector.broadcast %35 : vector<1x128xf32> to vector<8x128xf32>
    %37 = arith.addf %34, %36 : vector<8x128xf32>
    %c0_18 = arith.constant 0 : index
    %c0_19 = arith.constant 0 : index
    %38 = vector.load %arg6[%c0_18, %c0_19] : memref<8x128xf32, #tpu.memory_space<vmem>>, vector<8x128xf32>
    tpu.vector_store %arg6[%c0_18, %c0_19], %37 {strides = array<i32>} : memref<8x128xf32, #tpu.memory_space<vmem>>, vector<8x128xf32>,
    return
  }
  func.func @transform_0(%arg0: i32) -> (i32, i32) {
    %c0_i32 = arith.constant 0 : i32
    %c0_i32_0 = arith.constant 0 : i32
    return %arg0, %c0_i32 : i32, i32
  }
  func.func @transform_1(%arg0: i32) -> (i32, i32) {
    %c0_i32 = arith.constant 0 : i32
    %c0_i32_0 = arith.constant 0 : i32
    %c0_i32_1 = arith.constant 0 : i32
    return %c0_i32, %c0_i32_0 : i32, i32
  }
  func.func @transform_2(%arg0: i32) -> (i32, i32) {
    %c0_i32 = arith.constant 0 : i32
    %c0_i32_0 = arith.constant 0 : i32
    %c0_i32_1 = arith.constant 0 : i32
    return %c0_i32, %c0_i32_0 : i32, i32
  }
  func.func @transform_3(%arg0: i32) -> (i32, i32) {
    %c0_i32 = arith.constant 0 : i32
    %c0_i32_0 = arith.constant 0 : i32
    %c0_i32_1 = arith.constant 0 : i32
    return %c0_i32, %c0_i32_0 : i32, i32
  }
  func.func @transform_4(%arg0: i32) -> (i32, i32) {
    %c0_i32 = arith.constant 0 : i32
    %c0_i32_0 = arith.constant 0 : i32
    %c0_i32_1 = arith.constant 0 : i32
    return %c0_i32, %c0_i32_0 : i32, i32
  }
  func.func @transform_5(%arg0: i32) -> (i32, i32) {
    %c0_i32 = arith.constant 0 : i32
    %c0_i32_0 = arith.constant 0 : i32
    return %arg0, %c0_i32 : i32, i32
  }
}

</mosaic_0001>

<bundles_post_ra>
// kernel: tpu_custom_call.1
= control target key start
LH: loop header
LB: loop body
LE: loop exit
PB: predicated region body
PF: predicated region fallthrough
CT: control target
= control target key end

     0   :  { %6 = vsyncpa [#allocation3], 0  ;;  %s305_s0 = inlined_call_operand.hbm [shape: f32[8,128], index: 0, kind: input, shape index: {}]   ;;  %s306_s1 = inlined_call_operand.hbm [shape: f32[8,128], index: 1, kind: output, shape index: {}]  }
   0x1   :  { %7 = vsyncpa [#allocation4], 0  ;;  %s258_s6 = smov 0  }
   0x2 LB: > { %s145_s7 = sadd.s32 4294967295, %s244_s6   ;;  %p146_p0 = scmp.ge.s32.totalorder %s244_s6, 1  ;;  %s244_s6 = sphi %s258_s6, %s13_s6  }
   0x3   : > { %p60_p1 = scmp.lt.s32.totalorder %s244_s6, 3  ;;  %p270_p3 = scmp.eq.s32.totalorder %s145_s7, 0 }
   0x4   : > { %s246_s10 = smov [#allocation2]  }
   0x5   : > { %p266_p2 = pnand %p146_p0, %p60_p1  ;;  %s73_s11 = sshll.u32 %s246_s10, 4  ;;  %s74_s11 = int_to_ptr.vmem [resolvable:$true] %s73_s11 }
   0x6   : > { %s191_s12 = scalar_lea.vmem %s74_s11, 128  ;;  %p199_p10 = scmp.lt.s32.totalorder %s74_s11, %s74_s11 }
   0x7   : > { %p162_p4 = pneg %p266_p2  ;;  %p192_p7 = scmp.ne.s32.totalorder %s74_s11, %s191_s12 }
   0x8   : > { %p200_p11 = scmp.lt.s32.totalorder %s191_s12, %s191_s12 }
   0x9   : > { %p163_p5 = pnand %p270_p3, %p162_p4 }
   0xa   : > { %p201_p12 = por %p200_p11, %p199_p10 }
   0xb   : > { %p182_p6 = pneg %p163_p5 }
   0xd   : > { %p194_p8 = pnand %p192_p7, %p182_p6 }
   0xf   : > { %p195_p9 = pneg %p194_p8 }
  0x11   : > { %p202_p13 = pnand %p201_p12, %p195_p9 }
  0x13   : > { %205 = shalt.err (!%p202_p13)
}
  0x14   : > { %165 = dma.hbm_to_vmem [thread:$0]  (!%p163_p5), %s305_s0, 128, %s74_s11, [#allocation3]  }
  0x15   : > { %86 = sbr.rel (%p266_p2) target bundleno = 42 (0x2a), region = 24 }
  0x1a   : > { %235 = dma.done.wait (%p270_p3), [#allocation3], 128  }
  0x1b   : > { %237 = vsyncadd (%p270_p3), [#allocation3], 4294967168  ;;  %s247_s15 = smov [#allocation5]   ;;  %v96_v0 = vld [vmem:[#allocation2] sm:$0xff]  ;;  %p287_p0 = scmp.eq.s32.totalorder %s145_s7, 1 }
  0x1c   : > { %s106_s16 = sshll.u32 %s247_s15, 4  ;;  %v97_v1 = vadd.f32 1.0, %v96_v0  ;;  %s107_s16 = int_to_ptr.vmem [resolvable:$true] %s106_s16 }
  0x1d   : > { %s206_s18 = scalar_lea.vmem %s107_s16, 128  ;;  %p213_p5 = scmp.lt.s32.totalorder %s107_s16, %s107_s16 }
  0x1e   : > { %98 = vst [vmem:[#allocation5] sm:$0xff] %v97_v1  ;;  %p207_p1 = scmp.ne.s32.totalorder %s107_s16, %s206_s18  ;;  %p214_p6 = scmp.lt.s32.totalorder %s206_s18, %s206_s18 }
  0x20   : > { %p208_p2 = pnand %p207_p1, %p287_p0  ;;  %p215_p7 = por %p214_p6, %p213_p5 }
  0x22   : > { %p209_p4 = pneg %p208_p2 }
  0x24   : > { %p216_p3 = pnand %p215_p7, %p209_p4 }
  0x26   : > { %219 = shalt.err (!%p216_p3)
}
  0x27   : > { %159 = dma.vmem_to_hbm [thread:$0]  (%p287_p0), %s107_s16, 128, %s306_s1, [#allocation4]  }
  0x28   : > { %239 = dma.done.wait (%p287_p0), [#allocation4], 128  }
  0x29   : > { %241 = vsyncadd (%p287_p0), [#allocation4], 4294967168 }
  0x2a PF: > { %s13_s6 = sadd.s32 1, %s244_s6  }
  0x2b   : > { %p10_p8 = scmp.ge.s32.totalorder %s13_s6, 4  }
  0x2d   :  { %12 = sbr.rel (!%p10_p8) target bundleno = 2 (0x2), region = 53 }
  0x32   :  { %119 = vsyncpa [#allocation3], 1 }
  0x33   :  { %121 = vsyncpa [#allocation3 + $0x1], 1 }
  0x34   :  { %122 = vsyncpa [#allocation4], 1 }
  0x35   :  { %124 = vsyncpa [#allocation4 + $0x1], 1 }

// kernel: tpu_custom_call.1
= control target key start
LH: loop header
LB: loop body
LE: loop exit
PB: predicated region body
PF: predicated region fallthrough
CT: control target
= control target key end

     0   :  { %10 = vsyncpa [#allocation3], 0  ;;  %s1174_s0 = inlined_call_operand.hbm [shape: f32[16,32], index: 0, kind: input, shape index: {}]   ;;  %s1175_s1 = inlined_call_operand.hbm [shape: bf16[32,128], index: 1, kind: input, shape index: {}]   ;;  %s1176_s2 = inlined_call_operand.hbm [shape: f32[8,128], index: 2, kind: input, shape index: {}]   ;;  %s1177_s3 = inlined_call_operand.hbm [shape: bf16[128,128], index: 3, kind: input, shape index: {}]   ;;  %s1178_s4 = inlined_call_operand.vmem [shape: f32[1,128], index: 4, kind: input, shape index: {}]   ;;  %s1179_s5 = inlined_call_operand.hbm [shape: f32[16,128], index: 5, kind: output, shape index: {}]  }
   0x1   :  { %12 = vsyncpa [#allocation3 + $0x1], 0 }
   0x2   :  { %13 = vsyncpa [#allocation6], 0 }
   0x3   :  { %14 = vsyncpa [#allocation9], 0 }
   0x4   :  { %15 = vsyncpa [#allocation4], 0 }
   0x5   :  { %17 = vsyncpa [#allocation4 + $0x1], 0  ;;  %s975_s18 = smov 0   ;;  %s977_s19 = smov 0  }
   0x6   :  { %s979_s20 = smov 0   ;;  %s981_s21 = smov 0  }
   0x7 LB: > { %s996_s22 = sadd.s32 4294967295, %s934_s21   ;;  %s591_s23 = sadd.s32 4294967294, %s934_s21   ;;  %s934_s21 = sphi %s981_s21, %s1203_s21   ;;  %s930_s20 = sphi %s979_s20, %s1202_s20   ;;  %s926_s19 = sphi %s977_s19, %s1201_s19   ;;  %s922_s18 = sphi %s975_s18, %s1200_s18  }
   0x8   : > { %p43_p0 = scmp.ne.s32.totalorder %s926_s19, %s922_s18  ;;  %p1180_p1 = scmp.eq.s32.totalorder %s996_s22, 0 }
   0x9   : > { %p157_p3 = scmp.eq.s32.totalorder %s591_s23, 1  ;;  %p592_p5 = scmp.ge.s32.totalorder %s934_s21, 1 }
   0xa   : > { %p1005_p4 = por %p1180_p1, %p43_p0  ;;  %p164_p7 = scmp.lt.s32.totalorder %s934_s21, 3 }
   0xb   : > { %p1010_p6 = por %p157_p3, %p43_p0  ;;  %s936_s27 = smov [#allocation5]  }
   0xc   : > { %s1184_s24 = scalar_select %p1005_p4, 1, 0 }
   0xd   : > { %s1185_s25 = scalar_select %p1010_p6, 1, 0 }
   0xe   : > { %p1015_p8 = pnand %p592_p5, %p164_p7  ;;  %s176_s28 = sshll.u32 %s936_s27, 4  ;;  %s177_s28 = int_to_ptr.vmem [resolvable:$true] %s176_s28 }
   0xf   : > { %s937_s30 = smov [#allocation7]   ;;  %s938_s7 = smov [#allocation8]  }
  0x10   : > { %s1186_s26 = scalar_select %p1015_p8, 1, 0 }
  0x11   : > { %p677_p9 = pneg %p1015_p8  ;;  %s190_s6 = sshll.u32 %s937_s30, 4  ;;  %s191_s6 = int_to_ptr.vmem [resolvable:$true] %s190_s6 }
  0x12   : > { %s200_s8 = sshll.u32 %s938_s7, 4  ;;  %s767_s9 = scalar_lea.vmem %s177_s28, 256  ;;  %s201_s8 = int_to_ptr.vmem [resolvable:$true] %s200_s8 }
  0x13   : > { %p1024_p11 = pnand %p677_p9, %p1180_p1  ;;  %p768_p13 = scmp.ne.s32.totalorder %s177_s28, %s767_s9 }
  0x14   : > { %p775_p5 = scmp.lt.s32.totalorder %s177_s28, %s177_s28  ;;  %p776_p7 = scmp.lt.s32.totalorder %s767_s9, %s767_s9 }
  0x15   : > { %p758_p12 = pneg %p1024_p11 }
  0x16   : > { %p777_p9 = por %p776_p7, %p775_p5 }
  0x17   : > { %p770_p0 = pnand %p768_p13, %p758_p12 }
  0x19   : > { %p771_p3 = pneg %p770_p0 }
  0x1b   : > { %p778_p10 = pnand %p777_p9, %p771_p3 }
  0x1d   : > { %781 = shalt.err (!%p778_p10)
}
  0x1e   : > { %s939_s10 = smov 64   ;;  %s940_s11 = smov 4  }
  0x1f   : > { %680 = dma.hbm_to_vmem [thread:$0]  (!%p1024_p11), %s1175_s1, 256, %s177_s28, [#allocation6], %s939_s10, %s939_s10, %s940_s11  }
  0x20   : > { %s793_s14 = scalar_lea.vmem %s191_s6, 128  ;;  %p801_p2 = scmp.lt.s32.totalorder %s191_s6, %s191_s6 }
  0x21   : > { %p794_p1 = scmp.ne.s32.totalorder %s191_s6, %s793_s14  ;;  %p802_p6 = scmp.lt.s32.totalorder %s793_s14, %s793_s14 }
  0x23   : > { %p796_p13 = pnand %p794_p1, %p758_p12  ;;  %p803_p5 = por %p802_p6, %p801_p2 }
  0x25   : > { %p797_p0 = pneg %p796_p13 }
  0x27   : > { %p804_p3 = pnand %p803_p5, %p797_p0 }
  0x29   : > { %807 = shalt.err (!%p804_p3)
}
  0x2a   : > { %683 = dma.hbm_to_vmem [thread:$0]  (!%p1024_p11), %s1176_s2, 128, %s191_s6, [#allocation6]  }
  0x2b   : > { %s819_s17 = scalar_lea.vmem %s201_s8, 1024  ;;  %p827_p9 = scmp.lt.s32.totalorder %s201_s8, %s201_s8 }
  0x2c   : > { %p820_p10 = scmp.ne.s32.totalorder %s201_s8, %s819_s17  ;;  %p828_p13 = scmp.lt.s32.totalorder %s819_s17, %s819_s17 }
  0x2e   : > { %p822_p7 = pnand %p820_p10, %p758_p12  ;;  %p829_p4 = por %p828_p13, %p827_p9 }
  0x30   : > { %p823_p1 = pneg %p822_p7 }
  0x32   : > { %p830_p2 = pnand %p829_p4, %p823_p1 }
  0x34   : > { %833 = shalt.err (!%p830_p2)
}
  0x35   : > { %686 = dma.hbm_to_vmem [thread:$0]  (!%p1024_p11), %s1177_s3, 1024, %s201_s8, [#allocation9], %s939_s10, %s939_s10, %s940_s11  }
  0x36   : > { %s1055_s28 = sadd.s32 1, %s934_s21   ;;  %s30_s29 = sadd.s32 1, %s930_s20 }
  0x37   : > { %s27_s30 = ssub.s32 %s934_s21, %s1055_s28  ;;  %p37_p6 = scmp.ne.s32.totalorder %s930_s20, %s926_s19 }
  0x38   : > { %p28_p4 = scmp.eq.s32.totalorder %s27_s30, 0  ;;  %p38_p12 = scmp.eq.s32.totalorder %s934_s21, 0 }
  0x39   : > { %p698_p0 = scmp.lt.s32.totalorder %s934_s21, 2  ;;  %p1188_p3 = scmp.eq.s32.totalorder %s996_s22, 1 }
  0x3a   : > { %s1065_s6 = scalar_select %p28_p4, %s930_s20, %s30_s29  }
  0x3b   : > { %p39_p5 = por %p38_p12, %p37_p6  ;;  %p1069_p10 = por %p1188_p3, %p37_p6 }
  0x3c   : > { %s217_s9 = sand.u32 1, %s930_s20   ;;  %s598_s12 = sshll.u32 %s934_s21, 7 }
  0x3d   : > { %s1189_s7 = scalar_select %p1069_p10, 1, 0 }
  0x3e   : > { %s597_s8 = sshll.u32 %s217_s9, 3  ;;  %s1078_s13 = scalar_lea.hbm %s1174_s0, %s598_s12 }
  0x3f   : > { %s221_s14 = scalar_lea.vmem [#allocation2], %s597_s8  ;;  %p1080_p11 = pnand %p698_p0, %p39_p5 }
  0x40   : > { %s228_s15 = sshll.u32 %s221_s14, 4  ;;  %s218_s17 = scalar_lea.sflag [#allocation3], %s217_s9  ;;  %s229_s15 = int_to_ptr.vmem [resolvable:$true] %s228_s15 }
  0x41   : > { %s834_s23 = scalar_lea.hbm %s1078_s13, 128  ;;  %p836_p1 = pneg %p1080_p11 }
  0x42   : > { %p835_p7 = scmp.ne.s32.totalorder %s1078_s13, %s834_s23  ;;  %s839_s29 = scalar_lea.hbm %s1174_s0, 256 }
  0x43   : > { %p840_p2 = scmp.lt.s32.totalorder %s1078_s13, %s1174_s0  ;;  %p841_p4 = scmp.lt.s32.totalorder %s839_s29, %s834_s23 }
  0x44   : > { %p837_p9 = pnand %p836_p1, %p835_p7 }
  0x45   : > { %p842_p6 = por %p841_p4, %p840_p2 }
  0x46   : > { %p838_p13 = pneg %p837_p9 }
  0x48   : > { %p843_p12 = pnand %p842_p6, %p838_p13 }
  0x4a   : > { %846 = shalt.err (!%p843_p12)
}
  0x4b   : > { %s847_s10 = scalar_lea.vmem %s229_s15, 128  ;;  %s941_s9 = smov [#allocation2]  }
  0x4c   : > { %p848_p0 = scmp.ne.s32.totalorder %s229_s15, %s847_s10  ;;  %s852_s11 = sshll.u32 %s941_s9, 4  ;;  %s853_s11 = int_to_ptr.vmem [resolvable:$false] %s852_s11 }
  0x4d   : > { %s854_s14 = scalar_lea.vmem %s853_s11, 256  ;;  %p855_p7 = scmp.lt.s32.totalorder %s229_s15, %s853_s11 }
  0x4e   : > { %p850_p5 = pnand %p848_p0, %p836_p1  ;;  %p856_p9 = scmp.lt.s32.totalorder %s854_s14, %s847_s10 }
  0x50   : > { %p851_p3 = pneg %p850_p5  ;;  %p857_p10 = por %p856_p9, %p855_p7 }
  0x52   : > { %p858_p8 = pnand %p857_p10, %p851_p3 }
  0x54   : > { %861 = shalt.err (!%p858_p8)
}
  0x55   : > { %690 = dma.hbm_to_vmem [thread:$0]  (!%p1080_p11), %s1078_s13, 128, %s229_s15, %s218_s17  }
  0x56   : > { %p1191_p13 = scmp.ne.s32.totalorder %s1186_s26, 0 }
  0x57   : > { %s1101_s23 = sand.u32 (!%p1191_p13), 1, %s926_s19   ;;  %p1192_p10 = scmp.ne.s32.totalorder (!%p1191_p13), %s1184_s24, 0 }
  0x58   : > { %237 = sbr.rel (%p1191_p13) target bundleno = 833 (0x341), region = 40  ;;  %s600_s27 = sshll.u32 (!%p1191_p13), %s1101_s23, 3 }
  0x59   : > { %s240_s30 = scalar_lea.sflag (!%p1191_p13), [#allocation3], %s1101_s23  ;;  %s243_s29 = scalar_lea.vmem (!%p1191_p13), [#allocation2], %s600_s27 }
  0x5d   : > { %905 = dma.done.wait (%p1192_p10), %s240_s30, 128  }
  0x5e   : > { %907 = vsyncadd (%p1192_p10), %s240_s30, 4294967168  ;;  %p1193_p8 = scmp.eq.s32.totalorder %s996_s22, 0 }
  0x60   : > { %909 = dma.done.wait (%p1193_p8), [#allocation6], 384   ;;  %p1194_p11 = pmov %p1193_p8 }
  0x61   : > { %p1195_p1 = pmov %p1193_p8 }
  0x62   : > { %911 = vsyncadd (%p1194_p11), [#allocation6], 4294966912 }
  0x63   : > { %913 = dma.done.wait (%p1195_p1), [#allocation9], 1024   ;;  %p1196_p2 = pmov %p1195_p1 }
  0x64   : > { %vm284_vm0 = vcmask 261120   ;;  %v283_v0 = vld [vmem:[%s243_s29] sm:$0xff]  ;;  %v742_v7 = vld [vmem:[#allocation5 + $0x8] sm:$0xff]   ;;  %v942_v8 = vmov 0.0   ;;  %vm943_vm1 = vmmov 0   ;;  %v743_v9 = vld [vmem:[#allocation5] sm:$0xff]  }
  0x65   : > { %915 = vsyncadd (%p1196_p2), [#allocation9], 4294966272  ;;  %v285_v1 = vsel %vm284_vm0, %v283_v0, 0.0  ;;  %633 = vmatprep.subr.bf16.mxu0 %v942_v8  ;;  %637 = vmatprep.mubr.msk.bf16.mxu0 %vm943_vm1, %v942_v8  ;;  %v744_v10 = vld [vmem:[#allocation8 + $0x38] sm:$0xff]   ;;  %v745_v11 = vld [vmem:[#allocation8 + $0x30] sm:$0xff]   ;;  %s618_s13 = sshll.u32 %s996_s22, 7 }
  0x66   : > { %286 = vadd.xlane.f32.xlu0 %v285_v1  ;;  %634 = vmatpush3.bf16.msra.mxu0 %v742_v7  ;;  %v746_v18 = vld [vmem:[#allocation8 + $0x28] sm:$0xff]   ;;  %v747_v19 = vld [vmem:[#allocation8 + $0x20] sm:$0xff]   ;;  %v748_v20 = vld [vmem:[#allocation8 + $0x18] sm:$0xff]   ;;  %s281_s15 = scalar_lea.vmem [#allocation10], %s600_s27  ;;  %s1131_s8 = scalar_lea.hbm %s1179_s5, %s618_s13 }
  0x67   : > { %641 = vmatprep.subr.bf16.mxu1 %v942_v8  ;;  %635 = vmatprep.subr.bf16.mxu0 %v942_v8  ;;  %v749_v21 = vld [vmem:[#allocation8 + $0x10] sm:$0xff]   ;;  %v750_v22 = vld [vmem:[#allocation8 + $0x8] sm:$0xff]   ;;  %v751_v23 = vld [vmem:[#allocation8] sm:$0xff]   ;;  %s492_s16 = sshll.u32 %s281_s15, 4  ;;  %s479_s10 = scalar_lea.sflag [#allocation4], %s1101_s23  ;;  %s1133_s16 = int_to_ptr.vmem [resolvable:$true] %s492_s16 }
  0x68   : > { %657 = vmatprep.mubr.msk.bf16.mxu1 %vm943_vm1, %v942_v8  ;;  %642 = vmatpush3.bf16.msra.mxu1 %v744_v10  ;;  %v304_v24 = vld [vmem:[#allocation7] sm:$0xff]  ;;  %s862_s22 = scalar_lea.vmem %s1133_s16, 128  ;;  %p1197_p6 = scmp.ne.s32.totalorder %s1189_s7, 0 }
  0x69   : > { %643 = vmatprep.subr.bf16.mxu1 %v942_v8  ;;  %v608_v36 = vld [vmem:[%s1178_s4] ss:$0 sm:$0xff]  ;;  %p863_p4 = scmp.ne.s32.totalorder %s1133_s16, %s862_s22  ;;  %s944_s9 = smov [#allocation10]  }
  0x6a   : > { %636 = vmatpush3.bf16.msra.mxu0 %v743_v9  ;;  %s866_s11 = sshll.u32 %s944_s9, 4  ;;  %s867_s11 = int_to_ptr.vmem [resolvable:$false] %s866_s11 }
  0x6b   : > { %p864_p12 = pnand %p863_p4, %p1197_p6  ;;  %s868_s14 = scalar_lea.vmem %s867_s11, 256 }
  0x6c   : > { %644 = vmatpush3.bf16.msra.mxu1 %v745_v11  ;;  %p869_p5 = scmp.lt.s32.totalorder %s1133_s16, %s867_s11  ;;  %p870_p3 = scmp.lt.s32.totalorder %s868_s14, %s862_s22 }
  0x6d   : > { %645 = vmatprep.subr.bf16.mxu1 %v942_v8  ;;  %p865_p0 = pneg %p864_p12 }
  0x6e   : > { %p871_p7 = por %p870_p3, %p869_p5 }
  0x70   : > { %646 = vmatpush3.bf16.msra.mxu1 %v746_v18  ;;  %p872_p9 = pnand %p871_p7, %p865_p0 }
  0x71   : > { %647 = vmatprep.subr.bf16.mxu1 %v942_v8 }
  0x74   : > { %648 = vmatpush3.bf16.msra.mxu1 %v747_v19 }
  0x75   : > { %649 = vmatprep.subr.bf16.mxu1 %v942_v8 }
  0x78   : > { %650 = vmatpush3.bf16.msra.mxu1 %v748_v20 }
  0x79   : > { %651 = vmatprep.subr.bf16.mxu1 %v942_v8 }
  0x7c   : > { %652 = vmatpush3.bf16.msra.mxu1 %v749_v21 }
  0x7d   : > { %653 = vmatprep.subr.bf16.mxu1 %v942_v8 }
  0x80   : > { %654 = vmatpush3.bf16.msra.mxu1 %v750_v22 }
  0x81   : > { %655 = vmatprep.subr.bf16.mxu1 %v942_v8 }
  0x84   : > { %656 = vmatpush3.bf16.msra.mxu1 %v751_v23 }
  0xef   : > { %v287_v2 = vpop.xlane.xlu0 %286 }
  0xf0   : > { %v289_v3 = vmul.f32 0.03125, %v287_v2 }
  0xf2   : > { %v290_v4 = vsub.f32 %v283_v0, %v289_v3 }
  0xf4   : > { %v291_v5 = vmul.f32 %v290_v4, %v290_v4 }
  0xf6   : > { %v292_v6 = vsel %vm284_vm0, %v291_v5, 0.0 }
  0xf7   : > { %293 = vadd.xlane.f32.xlu0 %v292_v6 }
 0x180   : > { %v294_v12 = vpop.xlane.xlu0 %293 }
 0x181   : > { %v295_v13 = vmul.f32 0.03125, %v294_v12 }
 0x183   : > { %v296_v14 = vadd.f32 1e-05, %v295_v13 }
 0x185   : > { %752 = vrsqrt.f32 %v296_v14 }
 0x192   : > { %v753_v15 = vpop.eup %752 }
 0x193   : > { %v298_v16 = vmul.f32 %v753_v15, %v290_v4 }
 0x195   : > { %v299_v17 = vpack.c.bf16 %v298_v16, %v298_v16 }
 0x197   : > { %638 = vmatmul.mubr.msk.bf16.vlgmr.msra.gmra.mxu0 %vm284_vm0, %v299_v17 }
 0x257   : > { %v354_v25 = vpop.f32.mrf.mxu0 }
 0x258   : > { %v355_v26 = vadd.f32 %v354_v25, %v304_v24 }
 0x259   : > { %v639_v27 = vpop.f32.mrf.mxu0 }
 0x25a   : > { %v361_v28 = vmul.f32 0.70710677, %v355_v26  ;;  %v360_v32 = vmul.f32 0.5, %v355_v26 }
 0x25b   : > { %v357_v29 = vpop.f32.mrf.mxu0 }
 0x25c   : > { %754 = verf.f32 %v361_v28 }
 0x25d   : > { %v640_v30 = vpop.f32.mrf.mxu0 }
 0x269   : > { %v755_v31 = vpop.eup %754 }
 0x26a   : > { %v363_v33 = vadd.f32 1.0, %v755_v31 }
 0x26c   : > { %v364_v34 = vmul.f32 %v363_v33, %v360_v32 }
 0x26e   : > { %v365_v35 = vpack.c.bf16 %v364_v34, %v364_v34 }
 0x270   : > { %658 = vmatmul.mubr.bf16.vlgmr.msra.gmra.mxu1 %v365_v35 }
 0x330   : > { %v471_v37 = vpop.f32.mrf.mxu1 }
 0x331   : > { %v472_v38 = vadd.f32 %v608_v36, %v471_v37 }
 0x332   : > { %v659_v39 = vpop.f32.mrf.mxu1 }
 0x333   : > { %477 = vst [vmem:[%s281_s15] sm:$0xff] %v472_v38 }
 0x334   : > { %v474_v40 = vpop.f32.mrf.mxu1 }
 0x335   : > { %875 = shalt.err (!%p872_p9)
}
 0x336   : > { %s876_s27 = scalar_lea.hbm %s1131_s8, 128  ;;  %s880_s29 = scalar_lea.hbm %s1179_s5, 256 }
 0x337   : > { %p877_p13 = scmp.ne.s32.totalorder %s1131_s8, %s876_s27  ;;  %p881_p11 = scmp.lt.s32.totalorder %s1131_s8, %s1179_s5 }
 0x338   : > { %p882_p1 = scmp.lt.s32.totalorder %s880_s29, %s876_s27 }
 0x339   : > { %p878_p10 = pnand %p877_p13, %p1197_p6 }
 0x33a   : > { %p883_p2 = por %p882_p1, %p881_p11 }
 0x33b   : > { %p879_p8 = pneg %p878_p10 }
 0x33d   : > { %p884_p4 = pnand %p883_p2, %p879_p8 }
 0x33f   : > { %887 = shalt.err (!%p884_p4)
}
 0x340   : > { %675 = dma.vmem_to_hbm [thread:$0]  (%p1197_p6), %s1133_s16, 128, %s1131_s8, %s479_s10   ;;  %v660_v41 = vpop.f32.mrf.mxu1 }
 0x341 PF: > { %s504_s13 = sand.u32 1, %s922_s18   ;;  %p1198_p12 = scmp.ne.s32.totalorder %s1185_s25, 0 }
 0x342   : > { %p1199_p0 = scmp.ge.s32.totalorder %s934_s21, 2  ;;  %s505_s15 = scalar_lea.sflag [#allocation4], %s504_s13 }
 0x344   : > { %p692_p5 = pnand %p1199_p0, %p1198_p12 }
 0x346   : > { %p693_p3 = pneg %p692_p5 }
 0x348   : > { %917 = dma.done.wait (%p693_p3), %s505_s15, 128  }
 0x349   : > { %919 = vsyncadd (%p693_p3), %s505_s15, 4294967168  ;;  %p20_p7 = scmp.ge.s32.totalorder %s1055_s28, 4   ;;  %s1200_s18 = smov %s926_s19 }
 0x34a   : > { %s1201_s19 = smov %s930_s20  ;;  %s1202_s20 = smov %s1065_s6 }
 0x34b   : > { %s1203_s21 = smov %s1055_s28  ;;  %22 = sbr.rel (!%p20_p7) target bundleno = 7 (0x7), region = 97 }
 0x350   :  { %510 = vsyncpa [#allocation3], 1 }
 0x351   :  { %512 = vsyncpa [#allocation3 + $0x1], 1 }
 0x352   :  { %513 = vsyncpa [#allocation6], 1 }
 0x353   :  { %514 = vsyncpa [#allocation9], 1 }
 0x354   :  { %515 = vsyncpa [#allocation4], 1 }
 0x355   :  { %517 = vsyncpa [#allocation4 + $0x1], 1 }

</bundles_post_ra>
